<compile_context>
chip_gen: v7x
topology: tpu7x:2x2x1
jax: 0.10.0
libtpu: 0.0.40
codegen_flags: <defaults>
</compile_context>

<pallas_src>
import functools
import math

import jax
import jax.numpy as jnp
from jax.experimental import pallas as pl
from jax.experimental.pallas import tpu as pltpu


def _sdpa_kernel(q_ref, k_ref, v_ref, out_ref, *score_refs, scale, qk_dtype):
    # Block shapes: q (1, HB, TQ, D), k/v (1, HB, T, D),
    #               out (1, HB, TQ, D), score (1, HB, TQ, T) [optional]
    q = q_ref[0] * scale                      # scale folded into q (T*D mults)
    k = k_ref[0]
    v = v_ref[0]

    if qk_dtype is not None:
        q = q.astype(qk_dtype)
        k = k.astype(qk_dtype)

    # s[h, i, j] = sum_d q[h, i, d] * k[h, j, d]  -- no explicit K transpose.
    s = jax.lax.dot_general(
        q, k,
        dimension_numbers=(((2,), (2,)), ((0,), (0,))),
        preferred_element_type=jnp.float32)   # (HB, TQ, T), f32

    # Numerically stable softmax over the key axis (exact reciprocal: it only
    # acts on the (HB, TQ, 1) denominator, approx saves nothing).
    s_max = jnp.max(s, axis=-1, keepdims=True)
    e = jnp.exp(s - s_max)
    denom = jnp.sum(e, axis=-1, keepdims=True)
    p = e * pl.reciprocal(denom, approx=False)

    # Single downcast reused for both the score store and the PV matmul.
    p_lo = p.astype(v.dtype)
    if score_refs:
        score_refs[0][0] = p_lo.astype(score_refs[0].dtype)  # no-op cast if same

    # out[h, i, d] = sum_j p[h, i, j] * v[h, j, d]; f32 accumulation on the MXU.
    o = jax.lax.dot_general(
        p_lo, v,
        dimension_numbers=(((2,), (1,)), ((0,), (0,))),
        preferred_element_type=jnp.float32)   # (HB, TQ, D)
    out_ref[0] = o.astype(out_ref.dtype)


def _vmem_params():
    """Generation-aware (pipeline-buffer budget, scoped vmem limit) in bytes."""
    cap = None
    try:
        info = pltpu.get_tpu_info()
        cap = getattr(info, "vmem_capacity_bytes", None)
    except Exception:
        cap = None
    if cap is None:
        cap = 64 * 1024 * 1024                 # conservative: v7x per-TC VMEM
    if cap >= 128 * 1024 * 1024:               # v5e / v6e: 128 MiB physical
        return 64 * 1024 * 1024, 100 * 1024 * 1024
    # v7x (64 MiB per TC): leave headroom for f32 temporaries + internal scratch.
    return 20 * 1024 * 1024, min(48 * 1024 * 1024, int(cap * 0.75))


def _choose_tiles(H, T, D, in_itemsize, score_itemsize, *, want_score, vmem_budget):
    """Pick (head_tile, query_tile) so blocks + live f32 temporaries fit VMEM."""

    def footprint(hb, tq):
        qo = 2 * hb * tq * D * in_itemsize          # q + out blocks
        kv = 2 * hb * T * D * in_itemsize           # k + v blocks (resident)
        sc = hb * tq * T * score_itemsize if want_score else 0
        pipeline = 2 * (qo + kv + sc)               # double-buffered pipeline
        live_f32 = 3 * hb * tq * T * 4              # s, e, p intermediates
        return pipeline + live_f32

    # Query-tile candidates, largest first. Keep the MXU M dimension >= 128
    # whenever T allows it; tiny tiles only as a validated last resort.
    preferred = [c for c in (1024, 512, 256, 128) if c <= T and T % c == 0]
    if T <= 1024:
        preferred = [T] + preferred
    last_resort = [c for c in (64, 32, 16, 8) if c < T and T % c == 0]

    head_cands = [h for h in range(H, 0, -1) if H % h == 0]

    for tq in preferred:                 # keep tq large; shrink hb first
        for hb in head_cands:
            if footprint(hb, tq) <= vmem_budget:
                return hb, tq
    for tq in last_resort:
        for hb in head_cands:
            if footprint(hb, tq) <= vmem_budget:
                return hb, tq
    # Nothing fits the budget (huge T): fall back to the smallest legal config.
    # TODO(synk): key-axis (flash-style) tiling would bound VMEM independent of T.
    tq_min = (last_resort or preferred or [T])[-1]
    return 1, tq_min


def scale_dot_product_attention(q, k, v, mask=None, *, return_score=True,
                                use_bf16_matmul=False):
    """Pallas implementation of ScaleDotProductAttention.forward.

    Returns (value, attention_score) just like the PyTorch module (or just
    `value` if return_score=False). `mask` is accepted but has no effect:
    the reference's masked_fill result is discarded, so masking never applies.
    """
    del mask  # intentionally ignored (matches the reference semantics)
    B, H, T, D = q.shape
    assert k.shape == (B, H, T, D) and v.shape == (B, H, T, D)

    scale = 1.0 / math.sqrt(D)
    score_dtype = q.dtype                      # match the PyTorch dtype contract
    in_itemsize = jnp.dtype(q.dtype).itemsize
    score_itemsize = jnp.dtype(score_dtype).itemsize

    vmem_budget, vmem_limit = _vmem_params()
    hb, tq = _choose_tiles(H, T, D, in_itemsize, score_itemsize,
                           want_score=return_score, vmem_budget=vmem_budget)

    grid = (B, H // hb, T // tq)

    q_spec = pl.BlockSpec((1, hb, tq, D), lambda b, h, qi: (b, h, qi, 0))
    kv_spec = pl.BlockSpec((1, hb, T, D), lambda b, h, qi: (b, h, 0, 0))
    out_spec = pl.BlockSpec((1, hb, tq, D), lambda b, h, qi: (b, h, qi, 0))

    out_shapes = [jax.ShapeDtypeStruct((B, H, T, D), q.dtype)]
    out_specs = [out_spec]
    if return_score:
        out_shapes.append(jax.ShapeDtypeStruct((B, H, T, T), score_dtype))
        out_specs.append(
            pl.BlockSpec((1, hb, tq, T), lambda b, h, qi: (b, h, qi, 0)))

    qk_dtype = jnp.bfloat16 if (use_bf16_matmul and q.dtype == jnp.float32) else None

    results = pl.pallas_call(
        functools.partial(_sdpa_kernel, scale=scale, qk_dtype=qk_dtype),
        out_shape=tuple(out_shapes),
        grid_spec=pltpu.PrefetchScalarGridSpec(
            num_scalar_prefetch=0,
            grid=grid,
            in_specs=[q_spec, kv_spec, kv_spec],
            out_specs=tuple(out_specs),
        ),
        compiler_params=pltpu.CompilerParams(
            # B / head-tile axes are independent -> parallel (megacore split
            # lands there); the query-tile axis is "arbitrary" so K/V residency
            # across it is never broken by a core split.
            dimension_semantics=("parallel", "parallel", "arbitrary"),
            vmem_limit_bytes=vmem_limit,
        ),
    )(q, k, v)

    if return_score:
        out, score = results
        return out, score
    (out,) = results
    return out


def _reference(q, k, v):
    d = q.shape[-1]
    s = jnp.einsum("bhtd,bhsd->bhts", q, k) / math.sqrt(d)
    p = jax.nn.softmax(s, axis=-1)
    o = jnp.einsum("bhts,bhsd->bhtd", p, v)
    return o, p


if __name__ == "__main__":
    B, H, T, D = 2, 4, 8, 32
    key = jax.random.PRNGKey(0)
    kq, kk, kv = jax.random.split(key, 3)
    q = jax.random.normal(kq, (B, H, T, D), dtype=jnp.float32)
    k = jax.random.normal(kk, (B, H, T, D), dtype=jnp.float32)
    v = jax.random.normal(kv, (B, H, T, D), dtype=jnp.float32)

    out, score = scale_dot_product_attention(q, k, v)
    jax.block_until_ready((out, score))

    ref_out, ref_score = _reference(q, k, v)
    assert jnp.allclose(out, ref_out, atol=1e-3, rtol=1e-3)
    assert jnp.allclose(score, ref_score, atol=1e-3, rtol=1e-3)

    print("KERNEL_OK")
</pallas_src>

<mosaic_0001>
module attributes {stable_mosaic.version = 11 : i64} {
  func.func @_sdpa_kernel(%arg0: i32, %arg1: i32, %arg2: i32, %arg3: memref<1x4x8x32xf32, #tpu.memory_space<vmem>>, %arg4: memref<1x4x8x32xf32, #tpu.memory_space<vmem>>, %arg5: memref<1x4x8x32xf32, #tpu.memory_space<vmem>>, %arg6: memref<1x4x8x32xf32, #tpu.memory_space<vmem>>, %arg7: memref<1x4x8x8xf32, #tpu.memory_space<vmem>>) attributes {dimension_semantics = [#tpu.dimension_semantics<parallel>, #tpu.dimension_semantics<parallel>, #tpu.dimension_semantics<arbitrary>], iteration_bounds = array<i64: 2, 1, 1>, scalar_prefetch = 0 : i64, scratch_operands = 0 : i64, tpu.core_type = #tpu.core_type<tc>, window_params = [{transform_indices = @transform_0, window_bounds = array<i64: 1, 4, 8, 32>}, {transform_indices = @transform_1, window_bounds = array<i64: 1, 4, 8, 32>}, {transform_indices = @transform_2, window_bounds = array<i64: 1, 4, 8, 32>}, {transform_indices = @transform_3, window_bounds = array<i64: 1, 4, 8, 32>}, {transform_indices = @transform_4, window_bounds = array<i64: 1, 4, 8, 8>}]} {
    %c0 = arith.constant 0 : index
    %c0_0 = arith.constant 0 : index
    %c0_1 = arith.constant 0 : index
    %c0_2 = arith.constant 0 : index
    %0 = vector.load %arg3[%c0, %c0_0, %c0_1, %c0_2] : memref<1x4x8x32xf32, #tpu.memory_space<vmem>>, vector<1x4x8x32xf32>
    %1 = vector.shape_cast %0 : vector<1x4x8x32xf32> to vector<4x8x32xf32>
    %cst = arith.constant 0.176776692 : f32
    %2 = vector.broadcast %cst : f32 to vector<4x8x32xf32>
    %3 = arith.mulf %1, %2 : vector<4x8x32xf32>
    %c0_3 = arith.constant 0 : index
    %c0_4 = arith.constant 0 : index
    %c0_5 = arith.constant 0 : index
    %c0_6 = arith.constant 0 : index
    %4 = vector.load %arg4[%c0_3, %c0_4, %c0_5, %c0_6] : memref<1x4x8x32xf32, #tpu.memory_space<vmem>>, vector<1x4x8x32xf32>
    %5 = vector.shape_cast %4 : vector<1x4x8x32xf32> to vector<4x8x32xf32>
    %c0_7 = arith.constant 0 : index
    %c0_8 = arith.constant 0 : index
    %c0_9 = arith.constant 0 : index
    %c0_10 = arith.constant 0 : index
    %6 = vector.load %arg5[%c0_7, %c0_8, %c0_9, %c0_10] : memref<1x4x8x32xf32, #tpu.memory_space<vmem>>, vector<1x4x8x32xf32>
    %7 = vector.shape_cast %6 : vector<1x4x8x32xf32> to vector<4x8x32xf32>
    %cst_11 = arith.constant dense<0.000000e+00> : vector<4x8x8xf32>
    %8 = tpu.matmul %3, %5, %cst_11 {dimension_numbers = #tpu.dot_dimension_numbers<[2], [2], [1], [1], [0, 0, 0, 1, 1, 1], [0], [0]>} : vector<4x8x32xf32>, vector<4x8x32xf32>, vector<4x8x8xf32> -> vector<4x8x8xf32>
    %cst_12 = arith.constant dense<0xFF800000> : vector<4x8xf32>
    %9 = vector.multi_reduction <maximumf>, %8, %cst_12 [2] : vector<4x8x8xf32> to vector<4x8xf32>
    %10 = vector.shape_cast %9 : vector<4x8xf32> to vector<4x8x1xf32>
    %11 = vector.broadcast %10 : vector<4x8x1xf32> to vector<4x8x8xf32>
    %12 = arith.subf %8, %11 : vector<4x8x8xf32>
    %13 = math.exp %12 : vector<4x8x8xf32>
    %cst_13 = arith.constant dense<0.000000e+00> : vector<4x8xf32>
    %14 = vector.multi_reduction <add>, %13, %cst_13 [2] : vector<4x8x8xf32> to vector<4x8xf32>
    %15 = vector.shape_cast %14 : vector<4x8xf32> to vector<4x8x1xf32>
    %16 = tpu.reciprocal %15 : vector<4x8x1xf32> -> vector<4x8x1xf32>
    %17 = vector.broadcast %16 : vector<4x8x1xf32> to vector<4x8x8xf32>
    %18 = arith.mulf %13, %17 : vector<4x8x8xf32>
    %c0_14 = arith.constant 0 : index
    %c0_15 = arith.constant 0 : index
    %c0_16 = arith.constant 0 : index
    %c0_17 = arith.constant 0 : index
    %19 = vector.load %arg7[%c0_14, %c0_15, %c0_16, %c0_17] : memref<1x4x8x8xf32, #tpu.memory_space<vmem>>, vector<1x4x8x8xf32>
    %20 = vector.shape_cast %19 : vector<1x4x8x8xf32> to vector<4x8x8xf32>
    %21 = vector.shape_cast %18 : vector<4x8x8xf32> to vector<1x4x8x8xf32>
    tpu.vector_store %arg7[%c0_14, %c0_15, %c0_16, %c0_17], %21 {strides = array<i32>} : memref<1x4x8x8xf32, #tpu.memory_space<vmem>>, vector<1x4x8x8xf32>,
    %cst_18 = arith.constant dense<0.000000e+00> : vector<4x8x32xf32>
    %22 = tpu.matmul %18, %7, %cst_18 {dimension_numbers = #tpu.dot_dimension_numbers<[2], [1], [1], [2], [0, 0, 0, 1, 1, 2], [0], [0]>} : vector<4x8x8xf32>, vector<4x8x32xf32>, vector<4x8x32xf32> -> vector<4x8x32xf32>
    %c0_19 = arith.constant 0 : index
    %c0_20 = arith.constant 0 : index
    %c0_21 = arith.constant 0 : index
    %c0_22 = arith.constant 0 : index
    %23 = vector.load %arg6[%c0_19, %c0_20, %c0_21, %c0_22] : memref<1x4x8x32xf32, #tpu.memory_space<vmem>>, vector<1x4x8x32xf32>
    %24 = vector.shape_cast %23 : vector<1x4x8x32xf32> to vector<4x8x32xf32>
    %25 = vector.shape_cast %22 : vector<4x8x32xf32> to vector<1x4x8x32xf32>
    tpu.vector_store %arg6[%c0_19, %c0_20, %c0_21, %c0_22], %25 {strides = array<i32>} : memref<1x4x8x32xf32, #tpu.memory_space<vmem>>, vector<1x4x8x32xf32>,
    return
  }
  func.func @transform_0(%arg0: i32, %arg1: i32, %arg2: i32) -> (i32, i32, i32, i32) {
    %c0_i32 = arith.constant 0 : i32
    %c0_i32_0 = arith.constant 0 : i32
    return %arg0, %arg1, %arg2, %c0_i32 : i32, i32, i32, i32
  }
  func.func @transform_1(%arg0: i32, %arg1: i32, %arg2: i32) -> (i32, i32, i32, i32) {
    %c0_i32 = arith.constant 0 : i32
    %c0_i32_0 = arith.constant 0 : i32
    %c0_i32_1 = arith.constant 0 : i32
    return %arg0, %arg1, %c0_i32, %c0_i32_0 : i32, i32, i32, i32
  }
  func.func @transform_2(%arg0: i32, %arg1: i32, %arg2: i32) -> (i32, i32, i32, i32) {
    %c0_i32 = arith.constant 0 : i32
    %c0_i32_0 = arith.constant 0 : i32
    %c0_i32_1 = arith.constant 0 : i32
    return %arg0, %arg1, %c0_i32, %c0_i32_0 : i32, i32, i32, i32
  }
  func.func @transform_3(%arg0: i32, %arg1: i32, %arg2: i32) -> (i32, i32, i32, i32) {
    %c0_i32 = arith.constant 0 : i32
    %c0_i32_0 = arith.constant 0 : i32
    return %arg0, %arg1, %arg2, %c0_i32 : i32, i32, i32, i32
  }
  func.func @transform_4(%arg0: i32, %arg1: i32, %arg2: i32) -> (i32, i32, i32, i32) {
    %c0_i32 = arith.constant 0 : i32
    %c0_i32_0 = arith.constant 0 : i32
    return %arg0, %arg1, %arg2, %c0_i32 : i32, i32, i32, i32
  }
}

</mosaic_0001>

<bundles_post_ra>
// kernel: tpu_custom_call.1
= control target key start
LH: loop header
LB: loop body
LE: loop exit
PB: predicated region body
PF: predicated region fallthrough
CT: control target
= control target key end

     0   :  { %s2058_s0 = inlined_call_operand.hbm [shape: f32[2,4,8,32], index: 0, kind: input, shape index: {}]   ;;  %s2059_s1 = inlined_call_operand.hbm [shape: f32[2,4,8,32], index: 1, kind: input, shape index: {}]   ;;  %s2060_s2 = inlined_call_operand.hbm [shape: f32[2,4,8,32], index: 2, kind: input, shape index: {}]   ;;  %s2061_s3 = inlined_call_operand.hbm [shape: f32[2,4,8,32], index: 3, kind: output, shape index: {0}]   ;;  %s2062_s4 = inlined_call_operand.hbm [shape: f32[2,4,8,8], index: 4, kind: output, shape index: {1}]  }
   0x1   :  { %2074 = sst [smem:[#allocation19_spill]] %s2059_s1 }
   0x2   :  { %10 = vsyncpa [#allocation3], 0 }
   0x3   :  { %12 = vsyncpa [#allocation3 + $0x1], 0 }
   0x4   :  { %13 = vsyncpa [#allocation6], 0 }
   0x5   :  { %15 = vsyncpa [#allocation6 + $0x1], 0 }
   0x6   :  { %16 = vsyncpa [#allocation4], 0 }
   0x7   :  { %18 = vsyncpa [#allocation4 + $0x1], 0 }
   0x8   :  { %19 = vsyncpa [#allocation10], 0 }
   0x9   :  { %21 = vsyncpa [#allocation10 + $0x1], 0  ;;  %s1680_s15 = smov 0   ;;  %s1682_s16 = smov 0  }
   0xa   :  { %s1684_s17 = smov 0   ;;  %s1686_s18 = smov 0  }
   0xb   :  { %s1688_s19 = smov 0   ;;  %s1690_s20 = smov 0  }
   0xc LB: > { %2075 = sst [smem:[#allocation15_spill]] %s1638_s19  ;;  %s1711_s21 = sadd.s32 4294967295, %s1642_s20   ;;  %s1642_s20 = sphi %s1690_s20, %s27_s20   ;;  %s1638_s19 = sphi %s1688_s19, %s2100_s19   ;;  %s1634_s18 = sphi %s1686_s18, %s2099_s18   ;;  %s1630_s17 = sphi %s1684_s17, %s2103_s17   ;;  %s1626_s16 = sphi %s1682_s16, %s2102_s16   ;;  %s1622_s15 = sphi %s1680_s15, %s2101_s15  }
   0xd   : > { %2076 = sst [smem:[#allocation16_spill]] %s1642_s20  ;;  %s1236_s22 = sadd.s32 4294967294, %s1642_s20  }
   0xe   : > { %s46_s23 = sadd.s32 1, %s1638_s19  ;;  %s57_s24 = sadd.s32 1, %s1630_s17 }
   0xf   : > { %p48_p0 = scmp.ge.s32.totalorder %s46_s23, 2  ;;  %p64_p1 = scmp.ne.s32.totalorder %s1630_s17, %s1626_s16 }
  0x10   : > { %p65_p2 = scmp.eq.s32.totalorder %s1642_s20, 0  ;;  %p70_p3 = scmp.ne.s32.totalorder %s1626_s16, %s1622_s15 }
  0x11   : > { %s2105_s23 = smov (%p48_p0, %s46_s23), 0  ;;  %p71_p5 = scmp.eq.s32.totalorder %s1711_s21, 0 }
  0x12   : > { %2077 = sst [smem:[#allocation17_spill]] %s2105_s23  ;;  %p1723_p4 = por %p65_p2, %p64_p1 }
  0x13   : > { %s50_s26 = ssub.s32 %s1638_s19, %s2105_s23  ;;  %p154_p6 = scmp.eq.s32.totalorder %s1711_s21, 1 }
  0x14   : > { %p55_p7 = scmp.eq.s32.totalorder %s50_s26, 0  ;;  %p1731_p8 = por %p71_p5, %p70_p3 }
  0x15   : > { %p1735_p9 = por %p154_p6, %p64_p1  ;;  %p160_p10 = scmp.eq.s32.totalorder %s1236_s22, 1 }
  0x16   : > { %s2079_s27 = scalar_select %p1731_p8, 1, 0 }
  0x17   : > { %s2080_s28 = scalar_select %p1735_p9, 1, 0 }
  0x18   : > { %s1740_s29 = scalar_select %p55_p7, %s1630_s17, %s57_s24  }
  0x19   : > { %p1742_p11 = por %p160_p10, %p70_p3  ;;  %p1362_p13 = scmp.lt.s32.totalorder %s1642_s20, 2 }
  0x1a   : > { %2081 = sst [smem:[#allocation18_spill]] %s1740_s29  ;;  %s2063_s5 = sand.u32 1, %s1630_s17  }
  0x1b   : > { %s2082_s30 = scalar_select %p1742_p11, 1, 0 }
  0x1c   : > { %s1751_s6 = sshll.u32 %s2063_s5, 5  ;;  %s1754_s7 = sshll.u32 %s1638_s19, 9 }
  0x1d   : > { %p1758_p0 = pnand %p1362_p13, %p1723_p4  ;;  %s234_s9 = sand.u32 1, %s1642_s20  }
  0x1e   : > { %s2084_s1 = sld [smem:[#allocation19_spill]]  ;;  %s238_s13 = scalar_lea.vmem [#allocation5], %s1751_s6 }
  0x1f   : > { %s247_s14 = sshll.u32 %s238_s13, 4  ;;  %s1774_s22 = scalar_lea.sflag [#allocation6], %s234_s9  ;;  %s1771_s14 = int_to_ptr.vmem [resolvable:$true] %s247_s14 }
  0x20   : > { %p1780_p4 = pneg %p1758_p0 }
  0x24   : > { %s1767_s12 = scalar_lea.hbm %s2084_s1, %s1754_s7  ;;  %s1439_s11 = scalar_lea.hbm %s2084_s1, 1024 }
  0x25   : > { %s1434_s24 = scalar_lea.hbm %s1767_s12, 512  ;;  %p1440_p7 = scmp.lt.u32.totalorder %s1767_s12, %s2084_s1 }
  0x26   : > { %p1435_p3 = scmp.ne.s32.totalorder %s1767_s12, %s1434_s24  ;;  %p1441_p10 = scmp.lt.u32.totalorder %s1439_s11, %s1434_s24 }
  0x27   : > { %p1443_p12 = scmp.lt.u32.totalorder %s1434_s24, %s1767_s12 }
  0x28   : > { %p1437_p5 = pnand %p1780_p4, %p1435_p3  ;;  %p1442_p13 = por %p1441_p10, %p1440_p7 }
  0x2a   : > { %p1438_p6 = pneg %p1437_p5  ;;  %p1444_p1 = por %p1443_p12, %p1442_p13 }
  0x2c   : > { %p1445_p2 = pnand %p1444_p1, %p1438_p6 }
  0x2e   : > { %1448 = shalt.err (!%p1445_p2)
}
  0x2f   : > { %s1449_s9 = scalar_lea.vmem %s1771_s14, 512  ;;  %s1644_s26 = smov [#allocation5]  }
  0x30   : > { %p1450_p3 = scmp.ne.s32.totalorder %s1771_s14, %s1449_s9  ;;  %s1454_s10 = sshll.u32 %s1644_s26, 4  ;;  %s1455_s10 = int_to_ptr.vmem [resolvable:$false] %s1454_s10 }
  0x31   : > { %s1456_s5 = scalar_lea.vmem %s1455_s10, 1024  ;;  %p1457_p9 = scmp.lt.s32.totalorder %s1771_s14, %s1455_s10 }
  0x32   : > { %p1452_p5 = pnand %p1450_p3, %p1780_p4  ;;  %p1458_p8 = scmp.lt.s32.totalorder %s1456_s5, %s1449_s9 }
  0x34   : > { %p1453_p11 = pneg %p1452_p5  ;;  %p1459_p7 = por %p1458_p8, %p1457_p9 }
  0x36   : > { %p1460_p10 = pnand %p1459_p7, %p1453_p11 }
  0x38   : > { %1463 = shalt.err (!%p1460_p10)
}
  0x39   : > { %s2066_s24 = smov 128   ;;  %s2068_s11 = smov 8  }
  0x3a   : > { %1351 = dma.hbm_to_vmem [thread:$0]  (!%p1758_p0), %s1767_s12, 512, %s1771_s14, %s1774_s22, %s2066_s24, %s2066_s24, %s2068_s11  }
  0x3b   : > { %p2086_p8 = scmp.lt.s32.totalorder %s1642_s20, 3  ;;  %p2087_p9 = scmp.ge.s32.totalorder %s1642_s20, 1 }
  0x3c   : > { %s1819_s10 = scalar_lea.hbm %s2058_s0, %s1754_s7  ;;  %s214_s5 = scalar_lea.vmem [#allocation2], %s1751_s6 }
  0x3d   : > { %p1811_p11 = pnand %p2087_p9, %p2086_p8  ;;  %s224_s1 = sshll.u32 %s214_s5, 4  ;;  %s1822_s1 = int_to_ptr.vmem [resolvable:$true] %s224_s1 }
  0x3e   : > { %s1828_s24 = scalar_lea.hbm %s2060_s2, %s1754_s7  ;;  %s2089_s11 = sand.u32 1, %s1630_s17  }
  0x3f   : > { %s2088_s13 = scalar_select %p1811_p11, 1, 0 }
  0x40   : > { %s1832_s23 = scalar_lea.sflag [#allocation3], %s2089_s11  ;;  %s1464_s19 = scalar_lea.hbm %s1819_s10, 512 }
  0x41   : > { %p1465_p12 = scmp.ne.s32.totalorder %s1819_s10, %s1464_s19  ;;  %s1469_s29 = scalar_lea.hbm %s2058_s0, 1024 }
  0x42   : > { %p1470_p6 = scmp.lt.u32.totalorder %s1819_s10, %s2058_s0  ;;  %p1471_p13 = scmp.lt.u32.totalorder %s1469_s29, %s1464_s19 }
  0x43   : > { %p1467_p1 = pnand %p1465_p12, %p1780_p4  ;;  %p1473_p5 = scmp.lt.u32.totalorder %s1464_s19, %s1819_s10 }
  0x44   : > { %p1472_p3 = por %p1471_p13, %p1470_p6 }
  0x45   : > { %p1468_p2 = pneg %p1467_p1 }
  0x46   : > { %p1474_p7 = por %p1473_p5, %p1472_p3 }
  0x48   : > { %p1475_p10 = pnand %p1474_p7, %p1468_p2 }
  0x4a   : > { %1478 = shalt.err (!%p1475_p10)
}
  0x4b   : > { %s1479_s7 = scalar_lea.vmem %s1822_s1, 512  ;;  %s1647_s11 = smov [#allocation2]  }
  0x4c   : > { %p1480_p8 = scmp.ne.s32.totalorder %s1822_s1, %s1479_s7  ;;  %s1484_s12 = sshll.u32 %s1647_s11, 4  ;;  %s1485_s12 = int_to_ptr.vmem [resolvable:$false] %s1484_s12 }
  0x4d   : > { %s1486_s20 = scalar_lea.vmem %s1485_s12, 1024  ;;  %p1487_p1 = scmp.lt.s32.totalorder %s1822_s1, %s1485_s12 }
  0x4e   : > { %p1482_p9 = pnand %p1480_p8, %p1780_p4  ;;  %p1488_p11 = scmp.lt.s32.totalorder %s1486_s20, %s1479_s7 }
  0x50   : > { %p1483_p12 = pneg %p1482_p9  ;;  %p1489_p6 = por %p1488_p11, %p1487_p1 }
  0x52   : > { %p1490_p13 = pnand %p1489_p6, %p1483_p12 }
  0x54   : > { %1493 = shalt.err (!%p1490_p13)
}
  0x55   : > { %s2090_s19 = smov 8   ;;  %s2091_s29 = smov 128  }
  0x56   : > { %1348 = dma.hbm_to_vmem [thread:$0]  (!%p1758_p0), %s1819_s10, 512, %s1822_s1, %s1832_s23, %s2091_s29, %s2091_s29, %s2090_s19  }
  0x57   : > { %s261_s14 = scalar_lea.vmem [#allocation7], %s1751_s6  ;;  %s1494_s26 = scalar_lea.hbm %s1828_s24, 512 }
  0x58   : > { %s270_s9 = sshll.u32 %s261_s14, 4  ;;  %p1495_p11 = scmp.ne.s32.totalorder %s1828_s24, %s1494_s26  ;;  %s1860_s9 = int_to_ptr.vmem [resolvable:$true] %s270_s9 }
  0x59   : > { %s1499_s11 = scalar_lea.hbm %s2060_s2, 1024  ;;  %p1500_p5 = scmp.lt.u32.totalorder %s1828_s24, %s2060_s2 }
  0x5a   : > { %p1497_p2 = pnand %p1495_p11, %p1780_p4  ;;  %p1501_p7 = scmp.lt.u32.totalorder %s1499_s11, %s1494_s26 }
  0x5b   : > { %p1503_p8 = scmp.lt.u32.totalorder %s1494_s26, %s1828_s24 }
  0x5c   : > { %p1498_p3 = pneg %p1497_p2  ;;  %p1502_p10 = por %p1501_p7, %p1500_p5 }
  0x5e   : > { %p1504_p9 = por %p1503_p8, %p1502_p10 }
  0x60   : > { %p1505_p12 = pnand %p1504_p9, %p1498_p3 }
  0x62   : > { %1508 = shalt.err (!%p1505_p12)
}
  0x63   : > { %s1509_s1 = scalar_lea.vmem %s1860_s9, 512  ;;  %s1648_s23 = smov [#allocation7]  }
  0x64   : > { %p1510_p1 = scmp.ne.s32.totalorder %s1860_s9, %s1509_s1  ;;  %s1514_s6 = sshll.u32 %s1648_s23, 4  ;;  %s1515_s6 = int_to_ptr.vmem [resolvable:$false] %s1514_s6 }
  0x65   : > { %s1516_s10 = scalar_lea.vmem %s1515_s6, 1024  ;;  %p1517_p11 = scmp.lt.s32.totalorder %s1860_s9, %s1515_s6 }
  0x66   : > { %p1512_p6 = pnand %p1510_p1, %p1780_p4  ;;  %p1518_p2 = scmp.lt.s32.totalorder %s1516_s10, %s1509_s1 }
  0x68   : > { %p1513_p13 = pneg %p1512_p6  ;;  %p1519_p5 = por %p1518_p2, %p1517_p11 }
  0x6a   : > { %p1520_p7 = pnand %p1519_p5, %p1513_p13 }
  0x6c   : > { %1523 = shalt.err (!%p1520_p7)
}
  0x6d   : > { %1354 = dma.hbm_to_vmem [thread:$0]  (!%p1758_p0), %s1828_s24, 512, %s1860_s9, %s1774_s22, %s2091_s29, %s2091_s29, %s2090_s19  }
  0x6e   : > { %p2092_p4 = scmp.ne.s32.totalorder %s2088_s13, 0 }
  0x6f   : > { %s1890_s25 = sand.u32 (!%p2092_p4), 1, %s1626_s16   ;;  %p2093_p3 = scmp.ne.s32.totalorder (!%p2092_p4), %s2079_s27, 0 }
  0x70   : > { %282 = sbr.rel (%p2092_p4) target bundleno = 889 (0x379), region = 32  ;;  %s1893_s14 = sshll.u32 (!%p2092_p4), %s1890_s25, 5 }
  0x71   : > { %s285_s8 = scalar_lea.sflag (!%p2092_p4), [#allocation3], %s1890_s25  ;;  %s288_s26 = scalar_lea.vmem (!%p2092_p4), [#allocation2], %s1893_s14 }
  0x77   : > { %1605 = dma.done.wait (%p2093_p3), %s285_s8, 512  }
  0x78   : > { %1607 = vsyncadd (%p2093_p3), %s285_s8, 4294966784  ;;  %s293_s22 = sand.u32 1, %s1711_s21   ;;  %s297_s13 = scalar_lea.vmem [#allocation5], %s1893_s14 }
  0x79   : > { %s294_s24 = scalar_lea.sflag [#allocation6], %s293_s22 }
  0x7a   : > { %1609 = dma.done.wait (%p2093_p3), %s294_s24, 1024  }
  0x7b   : > { %1611 = vsyncadd (%p2093_p3), %s294_s24, 4294966272  ;;  %v1649_v0 = vmov 0.0   ;;  %vm1650_vm0 = vmmov 0   ;;  %vm367_vm1 = vcmask 261120   ;;  %v359_v1 = vld [vmem:[%s297_s13] sm:$0xff]  ;;  %v360_v3 = vld [vmem:[%s297_s13 + $0x8] sm:$0xff] }
  0x7c   : > { %1295 = vmatprep.subr.mxu0 %v1649_v0  ;;  %1297 = vmatprep.mubr.msk.f32.mxu0 %vm1650_vm0, %v1649_v0  ;;  %v351_v2 = vld [vmem:[%s288_s26] sm:$0xff]  ;;  %v352_v5 = vld [vmem:[%s288_s26 + $0x8] sm:$0xff]  ;;  %v353_v6 = vld [vmem:[%s288_s26 + $0x10] sm:$0xff]  ;;  %vm672_vm2 = vcmask 64512   ;;  %s306_s21 = scalar_lea.vmem [#allocation7], %s1893_s14  ;;  %s345_s27 = scalar_lea.vmem [#allocation9], %s1893_s14 }
  0x7d   : > { %1300 = vmatprep.subr.mxu1 %v1649_v0  ;;  %1302 = vmatprep.mubr.msk.f32.mxu1 %vm1650_vm0, %v1649_v0  ;;  %v355_v4 = vmul.f32 0.17677669, %v351_v2  ;;  %v361_v7 = vld [vmem:[%s297_s13 + $0x10] sm:$0xff]  ;;  %v356_v8 = vmul.f32 0.17677669, %v352_v5  ;;  %v354_v9 = vld [vmem:[%s288_s26 + $0x18] sm:$0xff] }
  0x7e   : > { %1296 = vmatpush3.xpose.msk.msra.mxu0 %vm367_vm1, %v359_v1  ;;  %1301 = vmatpush3.xpose.msk.msra.mxu1 %vm367_vm1, %v360_v3  ;;  %v362_v10 = vld [vmem:[%s297_s13 + $0x18] sm:$0xff]  ;;  %v357_v11 = vmul.f32 0.17677669, %v353_v6  ;;  %v358_v12 = vmul.f32 0.17677669, %v354_v9  ;;  %v363_v45 = vld [vmem:[%s306_s21] sm:$0xff] }
  0x7f   : > { %1305 = vmatprep.subr.mxu0 %v1649_v0  ;;  %1310 = vmatprep.subr.mxu1 %v1649_v0  ;;  %v364_v46 = vld [vmem:[%s306_s21 + $0x8] sm:$0xff]  ;;  %v365_v53 = vld [vmem:[%s306_s21 + $0x10] sm:$0xff]  ;;  %v366_v57 = vld [vmem:[%s306_s21 + $0x18] sm:$0xff]  ;;  %s1277_s19 = sshll.u32 %s1634_s18, 9  ;;  %s1058_s7 = sshll.u32 %s345_s27, 4  ;;  %s1965_s7 = int_to_ptr.vmem [resolvable:$true] %s1058_s7 }
  0x80   : > { %s1963_s5 = scalar_lea.hbm %s2062_s4, %s1277_s19  ;;  %s1023_s11 = scalar_lea.sflag [#allocation10], %s1890_s25 }
  0x81   : > { %1298 = vmatmul.mubr.msk.f32.vlgmr.msra.gmra.mrb[0].mxu0 %vm367_vm1, %v355_v4  ;;  %1303 = vmatmul.mubr.msk.f32.vlgmr.msra.gmra.mrb[0].mxu1 %vm367_vm1, %v356_v8  ;;  %s1524_s12 = scalar_lea.vmem %s1965_s7, 512  ;;  %p2094_p10 = scmp.ne.s32.totalorder %s2080_s28, 0 }
  0x82   : > { %1306 = vmatpush3.xpose.msk.msra.mxu0 %vm367_vm1, %v361_v7  ;;  %1307 = vmatprep.mubr.msk.f32.mxu0 %vm1650_vm0, %v1649_v0  ;;  %p1525_p0 = scmp.ne.s32.totalorder %s1965_s7, %s1524_s12  ;;  %s1651_s20 = smov [#allocation9]  }
  0x83   : > { %1311 = vmatpush3.xpose.msk.msra.mxu1 %vm367_vm1, %v362_v10  ;;  %1312 = vmatprep.mubr.msk.f32.mxu1 %vm1650_vm0, %v1649_v0  ;;  %s1528_s1 = sshll.u32 %s1651_s20, 4  ;;  %s1529_s1 = int_to_ptr.vmem [resolvable:$false] %s1528_s1 }
  0x84   : > { %1315 = vmatprep.subr.mxu0 %v1649_v0  ;;  %1320 = vmatprep.subr.mxu1 %v1649_v0  ;;  %p1526_p8 = pnand %p1525_p0, %p2094_p10  ;;  %s1530_s23 = scalar_lea.vmem %s1529_s1, 1024 }
  0x85   : > { %1308 = vmatmul.mubr.msk.f32.vlgmr.msra.gmra.mrb[2].mxu0 %vm367_vm1, %v357_v11  ;;  %p1531_p12 = scmp.lt.s32.totalorder %s1965_s7, %s1529_s1  ;;  %p1532_p1 = scmp.lt.s32.totalorder %s1530_s23, %s1524_s12 }
  0x86   : > { %1313 = vmatmul.mubr.msk.f32.vlgmr.msra.gmra.mrb[2].mxu1 %vm367_vm1, %v358_v12  ;;  %1317 = vmatprep.mubr.msk.f32.mxu0 %vm1650_vm0, %v1649_v0  ;;  %p1527_p9 = pneg %p1526_p8 }
  0x87   : > { %1322 = vmatprep.mubr.msk.f32.mxu1 %vm1650_vm0, %v1649_v0  ;;  %1316 = vmatpush3.msra.mxu0 %v363_v45  ;;  %p1533_p6 = por %p1532_p1, %p1531_p12 }
  0x88   : > { %1325 = vmatprep.subr.mxu0 %v1649_v0  ;;  %1321 = vmatpush3.msra.mxu1 %v364_v46 }
  0x89   : > { %1330 = vmatprep.subr.mxu1 %v1649_v0  ;;  %p1534_p13 = pnand %p1533_p6, %p1527_p9 }
 0x154   : > { %v440_v13 = vpop.f32.mrb[0].mxu0  ;;  %v516_v14 = vpop.f32.mrb[0].mxu1 }
 0x155   : > { %v1299_v15 = vpop.f32.mrb[1].mxu0  ;;  %v673_v16 = vsel %vm672_vm2, %v440_v13, -inf  ;;  %v1304_v17 = vpop.f32.mrb[1].mxu1  ;;  %v676_v18 = vsel %vm672_vm2, %v516_v14, -inf }
 0x156   : > { %674 = vmax.xlane.f32.xlu0 %v673_v16 }
 0x158   : > { %v592_v19 = vpop.f32.mrb[2].mxu0 }
 0x159   : > { %v1309_v20 = vpop.f32.mrb[3].mxu0  ;;  %v679_v21 = vsel %vm672_vm2, %v592_v19, -inf  ;;  %v668_v22 = vpop.f32.mrb[2].mxu1 }
 0x15a   : > { %677 = vmax.xlane.f32.xlu0 %v676_v18  ;;  %680 = vmax.xlane.f32.xlu1 %v679_v21  ;;  %v1314_v23 = vpop.f32.mrb[3].mxu1  ;;  %v682_v24 = vsel %vm672_vm2, %v668_v22, -inf }
 0x15e   : > { %683 = vmax.xlane.f32.xlu1 %v682_v24 }
 0x1e3   : > { %v675_v25 = vpop.xlane.xlu0 %674 }
 0x1e4   : > { %v685_v26 = vsub.f32 %v440_v13, %v675_v25 }
 0x1e6   : > { %v689_v27 = vmul.f32 1.442695, %v685_v26 }
 0x1e7   : > { %v678_v28 = vpop.xlane.xlu0 %677  ;;  %v681_v29 = vpop.xlane.xlu1 %680 }
 0x1e8   : > { %1418 = vpow2.f32 %v689_v27  ;;  %v686_v30 = vsub.f32 %v516_v14, %v678_v28  ;;  %v687_v31 = vsub.f32 %v592_v19, %v681_v29 }
 0x1ea   : > { %v691_v32 = vmul.f32 1.442695, %v686_v30  ;;  %v693_v33 = vmul.f32 1.442695, %v687_v31 }
 0x1eb   : > { %v684_v34 = vpop.xlane.xlu1 %683 }
 0x1ec   : > { %1420 = vpow2.f32 %v691_v32  ;;  %v688_v35 = vsub.f32 %v668_v22, %v684_v34 }
 0x1ed   : > { %1422 = vpow2.f32 %v693_v33 }
 0x1ee   : > { %v695_v36 = vmul.f32 1.442695, %v688_v35 }
 0x1f0   : > { %1424 = vpow2.f32 %v695_v36 }
 0x1f2   : > { %v1419_v37 = vpop.eup %1418 }
 0x1f3   : > { %v697_v38 = vsel %vm672_vm2, %v1419_v37, 0.0 }
 0x1f4   : > { %698 = vadd.xlane.f32.xlu0 %v697_v38 }
 0x1f6   : > { %v1421_v39 = vpop.eup %1420 }
 0x1f7   : > { %v1423_v40 = vpop.eup %1422  ;;  %v700_v41 = vsel %vm672_vm2, %v1421_v39, 0.0 }
 0x1f8   : > { %701 = vadd.xlane.f32.xlu1 %v700_v41  ;;  %v703_v42 = vsel %vm672_vm2, %v1423_v40, 0.0 }
 0x1f9   : > { %704 = vadd.xlane.f32.xlu0 %v703_v42 }
 0x1fa   : > { %v1425_v43 = vpop.eup %1424 }
 0x1fb   : > { %v706_v44 = vsel %vm672_vm2, %v1425_v43, 0.0 }
 0x1fc   : > { %707 = vadd.xlane.f32.xlu1 %v706_v44 }
 0x281   : > { %v699_v47 = vpop.xlane.xlu0 %698 }
 0x282   : > { %1426 = vrcp.f32 %v699_v47 }
 0x285   : > { %v702_v48 = vpop.xlane.xlu1 %701 }
 0x286   : > { %v705_v49 = vpop.xlane.xlu0 %704  ;;  %1428 = vrcp.f32 %v702_v48 }
 0x287   : > { %1430 = vrcp.f32 %v705_v49 }
 0x289   : > { %v708_v50 = vpop.xlane.xlu1 %707 }
 0x28a   : > { %1432 = vrcp.f32 %v708_v50 }
 0x28c   : > { %v1427_v51 = vpop.eup %1426 }
 0x28d   : > { %v713_v52 = vmul.f32 %v1427_v51, %v1419_v37 }
 0x28f   : > { %717 = vst.msk [vmem:[%s345_s27] sm:$0xff] %vm672_vm2, %v713_v52  ;;  %1318 = vmatmul.mubr.msk.f32.vlgmr.msra.gmra.mrb[4].mxu0 %vm672_vm2, %v713_v52 }
 0x290   : > { %v1429_v54 = vpop.eup %1428  ;;  %1326 = vmatpush3.msra.mxu0 %v365_v53  ;;  %1327 = vmatprep.mubr.msk.f32.mxu0 %vm1650_vm0, %v1649_v0 }
 0x291   : > { %v1431_v55 = vpop.eup %1430  ;;  %v714_v56 = vmul.f32 %v1429_v54, %v1421_v39 }
 0x292   : > { %v715_v58 = vmul.f32 %v1431_v55, %v1423_v40 }
 0x293   : > { %718 = vst.msk [vmem:[%s345_s27 + $0x8] sm:$0xff] %vm672_vm2, %v714_v56  ;;  %1323 = vmatmul.mubr.msk.f32.vlgmr.msra.gmra.mrb[4].mxu1 %vm672_vm2, %v714_v56 }
 0x294   : > { %v1433_v59 = vpop.eup %1432  ;;  %719 = vst.msk [vmem:[%s345_s27 + $0x10] sm:$0xff] %vm672_vm2, %v715_v58  ;;  %1328 = vmatmul.mubr.msk.f32.vlgmr.msra.gmra.mrb[6].mxu0 %vm672_vm2, %v715_v58  ;;  %1331 = vmatpush3.msra.mxu1 %v366_v57 }
 0x295   : > { %v716_v60 = vmul.f32 %v1433_v59, %v1425_v43  ;;  %1332 = vmatprep.mubr.msk.f32.mxu1 %vm1650_vm0, %v1649_v0 }
 0x297   : > { %720 = vst.msk [vmem:[%s345_s27 + $0x18] sm:$0xff] %vm672_vm2, %v716_v60  ;;  %1333 = vmatmul.mubr.msk.f32.vlgmr.msra.gmra.mrb[6].mxu1 %vm672_vm2, %v716_v60 }
 0x298   : > { %1537 = shalt.err (!%p1534_p13)
}
 0x299   : > { %s1538_s6 = scalar_lea.hbm %s1963_s5, 512  ;;  %s1542_s26 = scalar_lea.hbm %s2062_s4, 1024 }
 0x29a   : > { %p1539_p11 = scmp.ne.s32.totalorder %s1963_s5, %s1538_s6  ;;  %p1543_p7 = scmp.lt.u32.totalorder %s1963_s5, %s2062_s4 }
 0x29b   : > { %p1544_p4 = scmp.lt.u32.totalorder %s1542_s26, %s1538_s6  ;;  %p1546_p0 = scmp.lt.u32.totalorder %s1538_s6, %s1963_s5 }
 0x29c   : > { %p1540_p2 = pnand %p1539_p11, %p2094_p10 }
 0x29d   : > { %p1545_p3 = por %p1544_p4, %p1543_p7 }
 0x29e   : > { %p1541_p5 = pneg %p1540_p2 }
 0x29f   : > { %p1547_p8 = por %p1546_p0, %p1545_p3 }
 0x2a1   : > { %p1548_p9 = pnand %p1547_p8, %p1541_p5 }
 0x2a3   : > { %1551 = shalt.err (!%p1548_p9)
}
 0x2a4   : > { %s1652_s13 = smov 128   ;;  %s1653_s21 = smov 8  }
 0x2a5   : > { %1342 = dma.vmem_to_hbm [thread:$0]  (%p2094_p10), %s1965_s7, 512, %s1963_s5, %s1023_s11, %s1652_s13, %s1652_s13, %s1653_s21  }
 0x2a6   : > { %s338_s27 = scalar_lea.vmem [#allocation8], %s1893_s14  ;;  %s2005_s5 = scalar_lea.hbm %s2061_s3, %s1277_s19 }
 0x2a7   : > { %s1039_s29 = sshll.u32 %s338_s27, 4  ;;  %s1018_s7 = scalar_lea.sflag [#allocation4], %s1890_s25  ;;  %s1997_s29 = int_to_ptr.vmem [resolvable:$true] %s1039_s29 }
 0x2a8   : > { %s1552_s11 = scalar_lea.vmem %s1997_s29, 512  ;;  %s1654_s12 = smov [#allocation8]  }
 0x2a9   : > { %p1553_p12 = scmp.ne.s32.totalorder %s1997_s29, %s1552_s11  ;;  %s1556_s20 = sshll.u32 %s1654_s12, 4  ;;  %s1557_s20 = int_to_ptr.vmem [resolvable:$false] %s1556_s20 }
 0x2aa   : > { %s1558_s1 = scalar_lea.vmem %s1557_s20, 1024  ;;  %p1559_p13 = scmp.lt.s32.totalorder %s1997_s29, %s1557_s20 }
 0x2ab   : > { %p1554_p1 = pnand %p1553_p12, %p2094_p10  ;;  %p1560_p11 = scmp.lt.s32.totalorder %s1558_s1, %s1552_s11 }
 0x2ad   : > { %p1555_p6 = pneg %p1554_p1  ;;  %p1561_p2 = por %p1560_p11, %p1559_p13 }
 0x2af   : > { %p1562_p5 = pnand %p1561_p2, %p1555_p6 }
 0x362   : > { %v790_v61 = vpop.f32.mrb[4].mxu0 }
 0x363   : > { %1013 = vst.msk [vmem:[%s338_s27] sm:$0xff] %vm367_vm1, %v790_v61  ;;  %v1319_v62 = vpop.f32.mrb[5].mxu0 }
 0x366   : > { %v863_v63 = vpop.f32.mrb[4].mxu1 }
 0x367   : > { %1014 = vst.msk [vmem:[%s338_s27 + $0x8] sm:$0xff] %vm367_vm1, %v863_v63  ;;  %v936_v0 = vpop.f32.mrb[6].mxu0  ;;  %v1324_v1 = vpop.f32.mrb[5].mxu1 }
 0x368   : > { %1015 = vst.msk [vmem:[%s338_s27 + $0x10] sm:$0xff] %vm367_vm1, %v936_v0  ;;  %v1329_v2 = vpop.f32.mrb[7].mxu0 }
 0x36a   : > { %v1009_v3 = vpop.f32.mrb[6].mxu1 }
 0x36b   : > { %1016 = vst.msk [vmem:[%s338_s27 + $0x18] sm:$0xff] %vm367_vm1, %v1009_v3  ;;  %v1334_v4 = vpop.f32.mrb[7].mxu1 }
 0x36c   : > { %1565 = shalt.err (!%p1562_p5)
}
 0x36d   : > { %s1566_s18 = scalar_lea.hbm %s2005_s5, 512  ;;  %s1570_s6 = scalar_lea.hbm %s2061_s3, 1024 }
 0x36e   : > { %p1567_p7 = scmp.ne.s32.totalorder %s2005_s5, %s1566_s18  ;;  %p1571_p0 = scmp.lt.u32.totalorder %s2005_s5, %s2061_s3 }
 0x36f   : > { %p1572_p8 = scmp.lt.u32.totalorder %s1570_s6, %s1566_s18  ;;  %p1574_p12 = scmp.lt.u32.totalorder %s1566_s18, %s2005_s5 }
 0x370   : > { %p1568_p4 = pnand %p1567_p7, %p2094_p10 }
 0x371   : > { %p1573_p9 = por %p1572_p8, %p1571_p0 }
 0x372   : > { %p1569_p3 = pneg %p1568_p4 }
 0x373   : > { %p1575_p1 = por %p1574_p12, %p1573_p9 }
 0x375   : > { %p1576_p6 = pnand %p1575_p1, %p1569_p3 }
 0x377   : > { %1579 = shalt.err (!%p1576_p6)
}
 0x378   : > { %1341 = dma.vmem_to_hbm [thread:$0]  (%p2094_p10), %s1997_s29, 512, %s2005_s5, %s1018_s7, %s1652_s13, %s1652_s13, %s1653_s21  }
 0x379 PF: > { %s2095_s26 = sld [smem:[#allocation16_spill]]  ;;  %s1073_s22 = sand.u32 1, %s1622_s15  }
 0x37a   : > { %p2096_p13 = scmp.ne.s32.totalorder %s2082_s30, 0  ;;  %s1074_s24 = scalar_lea.sflag [#allocation4], %s1073_s22 }
 0x37f   : > { %p2097_p11 = scmp.ge.s32.totalorder %s2095_s26, 2 }
 0x381   : > { %p1356_p2 = pnand %p2097_p11, %p2096_p13 }
 0x383   : > { %1613 = dma.done.wait (!%p1356_p2), %s1074_s24, 512  }
 0x384   : > { %1615 = vsyncadd (!%p1356_p2), %s1074_s24, 4294966784  ;;  %s1083_s28 = scalar_lea.sflag [#allocation10], %s1073_s22 }
 0x385   : > { %1617 = dma.done.wait (!%p1356_p2), %s1083_s28, 512  }
 0x386   : > { %1619 = vsyncadd (!%p1356_p2), %s1083_s28, 4294966784  ;;  %s27_s20 = sadd.s32 1, %s2095_s26   ;;  %s2098_s25 = sld [smem:[#allocation18_spill]] }
 0x387   : > { %p24_p5 = scmp.ge.s32.totalorder %s27_s20, 4   ;;  %s2099_s18 = sld [smem:[#allocation15_spill]] }
 0x388   : > { %s2100_s19 = sld [smem:[#allocation17_spill]]  ;;  %s2101_s15 = smov %s1626_s16 }
 0x389   : > { %s2102_s16 = smov %s1630_s17  ;;  %26 = sbr.rel (!%p24_p5) target bundleno = 12 (0xc), region = 118 }
 0x38c   : > { %s2103_s17 = smov %s2098_s25 }
 0x390   :  { %1088 = vsyncpa [#allocation3], 1 }
 0x391   :  { %1090 = vsyncpa [#allocation3 + $0x1], 1 }
 0x392   :  { %1091 = vsyncpa [#allocation6], 1 }
 0x393   :  { %1093 = vsyncpa [#allocation6 + $0x1], 1 }
 0x394   :  { %1094 = vsyncpa [#allocation4], 1 }
 0x395   :  { %1096 = vsyncpa [#allocation4 + $0x1], 1 }
 0x396   :  { %1097 = vsyncpa [#allocation10], 1 }
 0x397   :  { %1099 = vsyncpa [#allocation10 + $0x1], 1 }

</bundles_post_ra>
